<compile_context>
chip_gen: v7x
topology: tpu7x:2x2x1
jax: 0.10.0
libtpu: 0.0.40
codegen_flags: <defaults>
</compile_context>

<pallas_src>
import functools

import numpy as np
import jax
import jax.numpy as jnp
from jax import lax
from jax.experimental import pallas as pl
from jax.experimental.pallas import tpu as pltpu


def _features_linear_kernel(x_ref, w_ref, b_ref, o_ref, *, field_slices, fast):
    # x_ref: (F, TB)  int32   VMEM  raw per-field indices, batch on the lane axis
    # w_ref: (Vp, 1)  float32 VMEM  re-packed table (8-aligned per-field slices)
    # b_ref: (1, 1)   float32 SMEM  scalar bias
    # o_ref: (1, TB)  float32 VMEM  lane-dense output tile
    # field_slices: static tuple of (row_start, padded_rows) per field.
    tb = x_ref.shape[1]
    acc = jnp.zeros((1, tb), jnp.float32)

    for f, (row0, rows) in enumerate(field_slices):
        # Sublane-broadcast of field f's raw index across this field's vocab
        # slice; stride-0 load uses the vld slots instead of XLU/VALU.
        if fast:
            xb = x_ref[pl.ds(f, rows, stride=0), :]                  # (rows, TB)
        else:
            xb = jnp.broadcast_to(x_ref[f:f + 1, :], (rows, tb))     # fallback

        # One-hot over only this field's slice.  Padding rows (>= field_dim)
        # can never match an in-range index, so they contribute exactly 0.
        local_iota = lax.broadcasted_iota(jnp.int32, (rows, tb), 0)
        eq = local_iota == xb                                        # (rows, TB)
        w_f = w_ref[row0:row0 + rows, :]                             # (rows, 1)

        if fast:
            # Contract on the (otherwise idle) MXU: (1,rows) x (rows,TB) ->
            # (1,TB).  f32 operands + HIGHEST precision keep the selected
            # weight exact to ~1 ulp (the mask is exactly 0/1).
            counts = eq.astype(jnp.float32)
            acc = acc + lax.dot_general(
                w_f, counts,
                dimension_numbers=(((0,), (0,)), ((), ())),
                precision=lax.Precision.HIGHEST,
                preferred_element_type=jnp.float32)
        else:
            # Conservative path: VPU select + XLU reduce over the slice only.
            sel = jnp.where(eq, w_f, 0.0)                            # (rows, TB)
            acc = acc + jnp.sum(sel, axis=0, keepdims=True)

    o_ref[...] = (acc + b_ref[0, 0]).astype(o_ref.dtype)


def _pack_weight(weight, field_dims):
    """Repack the (sum(field_dims), 1) table so every field's slice starts on
    an 8-sublane boundary and is zero-padded to a multiple of 8 rows.
    Returns (packed (Vp, 1) f32 table, tuple of (row_start, rows) per field)."""
    offsets = np.concatenate(([0], np.cumsum(field_dims)[:-1])).astype(np.int64)
    parts, slices, row = [], [], 0
    for f, fd in enumerate(field_dims):
        rows = ((fd + 7) // 8) * 8
        w_f = weight[int(offsets[f]):int(offsets[f]) + fd, :].astype(jnp.float32)
        if rows != fd:
            w_f = jnp.pad(w_f, ((0, rows - fd), (0, 0)))
        parts.append(w_f)
        slices.append((row, rows))
        row += rows
    return jnp.concatenate(parts, axis=0), tuple(slices)


@functools.partial(jax.jit, static_argnames=("field_dims", "block_b", "fast"))
def _features_linear_impl(x, weight, bias, *, field_dims, block_b, fast):
    B, F = x.shape
    assert F == len(field_dims)

    w_packed, field_slices = _pack_weight(weight, field_dims)
    Vp = w_packed.shape[0]

    # Batch tile: lane-aligned (multiple of 128), capped at block_b.  At the
    # default tb=16384, per-step transients are only a few MiB -> comfortably
    # inside the 32 MiB scoped-VMEM budget (and v7x's 64 MiB physical VMEM).
    tb = min(block_b, max(128, pl.cdiv(B, 128) * 128))
    Bp = pl.cdiv(B, tb) * tb

    # (F, B): batch on the lane axis.  Padding lanes use index 0 (valid row;
    # computed then discarded by the [:B] slice).  Kept inside the same jit as
    # the pallas_call so XLA fuses the transpose/pad/cast relayout.
    x_t = jnp.transpose(x.astype(jnp.int32))
    if Bp != B:
        x_t = jnp.pad(x_t, ((0, 0), (0, Bp - B)))

    b_smem = bias.reshape(1, 1).astype(jnp.float32)

    kernel = functools.partial(_features_linear_kernel,
                               field_slices=field_slices, fast=fast)

    out = pl.pallas_call(
        kernel,
        out_shape=jax.ShapeDtypeStruct((1, Bp), jnp.float32),
        grid=(Bp // tb,),
        in_specs=[
            pl.BlockSpec((F, tb), lambda i: (0, i)),            # indices: tiled batch
            pl.BlockSpec((Vp, 1), lambda i: (0, 0)),            # table: resident
            pl.BlockSpec(memory_space=pltpu.MemorySpace.SMEM),  # bias scalar
        ],
        out_specs=pl.BlockSpec((1, tb), lambda i: (0, i)),      # lane-dense output
        compiler_params=pltpu.CompilerParams(
            # NOTE: on v7x, true dual-TensorCore sharding of this axis needs
            # pltpu.CORE_PARALLEL (or an explicit core_map); "parallel" is kept
            # here because it is safe on all generations.
            dimension_semantics=("parallel",),
            vmem_limit_bytes=32 * 1024 * 1024,
        ),
    )(x_t, w_packed, b_smem)

    return out[0, :B].reshape(B, 1)


def features_linear(x, weight, bias, field_dims, *, block_b=16384):
    """FM linear term.

    x: (B, F) integer per-field indices (raw, before adding offsets);
    weight: (sum(field_dims), 1) f32 table; bias: (1,) f32;
    field_dims: per-field vocabulary sizes.  Returns (B, 1) f32.

    TODO(synk): for realistic CTR vocabularies (V >> 1e4) the O(V*B)
    compare-over-vocab gather should be replaced by a DMA-gather design
    (PrefetchScalarGridSpec + manual make_async_copy).
    """
    field_dims = tuple(int(d) for d in field_dims)
    try:
        return _features_linear_impl(x, weight, bias, field_dims=field_dims,
                                     block_b=int(block_b), fast=True)
    except Exception:
        # Fallback if this jax/Mosaic build rejects the stride-0 broadcast load
        # or the f32 MXU contraction: identical math, slightly more VPU/XLU work.
        return _features_linear_impl(x, weight, bias, field_dims=field_dims,
                                     block_b=int(block_b), fast=False)


def reference(x, weight, bias, field_dims):
    offsets = jnp.asarray(
        np.concatenate(([0], np.cumsum(field_dims)[:-1])).astype(np.int32))
    idx = x.astype(jnp.int32) + offsets[None, :]
    emb = jnp.take(weight[:, 0], idx, axis=0)                    # (B, F)
    return jnp.sum(emb, axis=1, keepdims=True) + bias[None, :]


def _make_inputs(key, field_dims, batch):
    V = int(sum(field_dims))
    k_w, k_b, k_x = jax.random.split(key, 3)
    # torch.nn.init.xavier_uniform_ on a (V, 1) weight: bound = sqrt(6/(V+1)).
    bound = float(np.sqrt(6.0 / (V + 1)))
    weight = jax.random.uniform(k_w, (V, 1), jnp.float32, -bound, bound)
    bias = jax.random.uniform(k_b, (1,), jnp.float32, -0.1, 0.1)
    cols = []
    for fd in field_dims:
        k_x, sub = jax.random.split(k_x)
        cols.append(jax.random.randint(sub, (batch, 1), 0, fd, jnp.int32))
    x = jnp.concatenate(cols, axis=1)                            # (batch, F)
    return x, weight, bias


if __name__ == "__main__":
    key = jax.random.PRNGKey(0)
    k1, k2 = jax.random.split(key)

    # Test 1: the module's own configuration at a small batch, zero-init bias.
    field_dims1 = (8, 16, 24)
    x1, w1, _ = _make_inputs(k1, field_dims1, batch=8)
    b1 = jnp.zeros((1,), jnp.float32)
    y1 = jax.block_until_ready(features_linear(x1, w1, b1, field_dims1))
    np.testing.assert_allclose(np.asarray(y1),
                               np.asarray(reference(x1, w1, b1, field_dims1)),
                               rtol=1e-6, atol=1e-6)
    assert y1.shape == (8, 1) and y1.dtype == jnp.float32

    # Test 2: non-8-aligned field dims, non-128-aligned batch, multi-step grid.
    field_dims2 = (5, 7, 11, 3)
    x2, w2, b2 = _make_inputs(k2, field_dims2, batch=300)
    y2 = jax.block_until_ready(
        features_linear(x2, w2, b2, field_dims2, block_b=128))
    np.testing.assert_allclose(np.asarray(y2),
                               np.asarray(reference(x2, w2, b2, field_dims2)),
                               rtol=1e-6, atol=1e-6)
    assert y2.shape == (300, 1) and y2.dtype == jnp.float32

    print("KERNEL_OK")
</pallas_src>

<mosaic_0001>
module attributes {stable_mosaic.version = 11 : i64} {
  func.func @_features_linear_kernel(%arg0: i32, %arg1: memref<3x128xi32, #tpu.memory_space<vmem>>, %arg2: memref<48x1xf32, #tpu.memory_space<vmem>>, %arg3: memref<1x1xf32, #tpu.memory_space<smem>>, %arg4: memref<1x128xf32, #tpu.memory_space<vmem>>) attributes {dimension_semantics = [#tpu.dimension_semantics<parallel>], iteration_bounds = array<i64: 1>, scalar_prefetch = 0 : i64, scratch_operands = 0 : i64, tpu.core_type = #tpu.core_type<tc>, window_params = [{transform_indices = @transform_0, window_bounds = array<i64: 3, 128>}, {pipeline_mode = #tpu.pipeline_mode<synchronous>, transform_indices = @transform_1, window_bounds = array<i64: 48, 1>}, {transform_indices = @transform_2, window_bounds = array<i64: 1, 1>}, {transform_indices = @transform_3, window_bounds = array<i64: 1, 128>}]} {
    %cst = arith.constant 0.000000e+00 : f32
    %0 = vector.broadcast %cst : f32 to vector<1x128xf32>
    %c0 = arith.constant 0 : index
    %c0_0 = arith.constant 0 : index
    %1 = tpu.strided_load %arg1[%c0, %c0_0] {strides = array<i32: 0, 1>} : memref<3x128xi32, #tpu.memory_space<vmem>>, vector<8x128xi32>
    %2 = tpu.iota {dimensions = array<i32: 0>} : vector<8x128xi32>
    %3 = arith.cmpi eq, %2, %1 : vector<8x128xi32>
    %c0_1 = arith.constant 0 : index
    %c0_2 = arith.constant 0 : index
    %4 = vector.load %arg2[%c0_1, %c0_2] : memref<48x1xf32, #tpu.memory_space<vmem>>, vector<8x1xf32>
    %5 = arith.extui %3 : vector<8x128xi1> to vector<8x128xi32>
    %6 = arith.sitofp %5 : vector<8x128xi32> to vector<8x128xf32>
    %cst_3 = arith.constant dense<0.000000e+00> : vector<1x128xf32>
    %7 = tpu.matmul %4, %6, %cst_3 {dimension_numbers = #tpu.dot_dimension_numbers<[0], [0], [1], [1], [0, 1, 1, 1], [], []>, precision = #tpu.contract_precision<fp32>} : vector<8x1xf32>, vector<8x128xf32>, vector<1x128xf32> -> vector<1x128xf32>
    %8 = arith.addf %0, %7 : vector<1x128xf32>
    %c1 = arith.constant 1 : index
    %c0_4 = arith.constant 0 : index
    %9 = tpu.strided_load %arg1[%c1, %c0_4] {strides = array<i32: 0, 1>} : memref<3x128xi32, #tpu.memory_space<vmem>>, vector<16x128xi32>
    %10 = tpu.iota {dimensions = array<i32: 0>} : vector<16x128xi32>
    %11 = arith.cmpi eq, %10, %9 : vector<16x128xi32>
    %c8 = arith.constant 8 : index
    %c0_5 = arith.constant 0 : index
    %12 = vector.load %arg2[%c8, %c0_5] : memref<48x1xf32, #tpu.memory_space<vmem>>, vector<16x1xf32>
    %13 = arith.extui %11 : vector<16x128xi1> to vector<16x128xi32>
    %14 = arith.sitofp %13 : vector<16x128xi32> to vector<16x128xf32>
    %cst_6 = arith.constant dense<0.000000e+00> : vector<1x128xf32>
    %15 = tpu.matmul %12, %14, %cst_6 {dimension_numbers = #tpu.dot_dimension_numbers<[0], [0], [1], [1], [0, 1, 1, 1], [], []>, precision = #tpu.contract_precision<fp32>} : vector<16x1xf32>, vector<16x128xf32>, vector<1x128xf32> -> vector<1x128xf32>
    %16 = arith.addf %8, %15 : vector<1x128xf32>
    %c2 = arith.constant 2 : index
    %c0_7 = arith.constant 0 : index
    %17 = tpu.strided_load %arg1[%c2, %c0_7] {strides = array<i32: 0, 1>} : memref<3x128xi32, #tpu.memory_space<vmem>>, vector<24x128xi32>
    %18 = tpu.iota {dimensions = array<i32: 0>} : vector<24x128xi32>
    %19 = arith.cmpi eq, %18, %17 : vector<24x128xi32>
    %c24 = arith.constant 24 : index
    %c0_8 = arith.constant 0 : index
    %20 = vector.load %arg2[%c24, %c0_8] : memref<48x1xf32, #tpu.memory_space<vmem>>, vector<24x1xf32>
    %21 = arith.extui %19 : vector<24x128xi1> to vector<24x128xi32>
    %22 = arith.sitofp %21 : vector<24x128xi32> to vector<24x128xf32>
    %cst_9 = arith.constant dense<0.000000e+00> : vector<1x128xf32>
    %23 = tpu.matmul %20, %22, %cst_9 {dimension_numbers = #tpu.dot_dimension_numbers<[0], [0], [1], [1], [0, 1, 1, 1], [], []>, precision = #tpu.contract_precision<fp32>} : vector<24x1xf32>, vector<24x128xf32>, vector<1x128xf32> -> vector<1x128xf32>
    %24 = arith.addf %16, %23 : vector<1x128xf32>
    %c0_10 = arith.constant 0 : index
    %c0_11 = arith.constant 0 : index
    %25 = memref.load %arg3[%c0_10, %c0_11] : memref<1x1xf32, #tpu.memory_space<smem>>
    %26 = vector.broadcast %25 : f32 to vector<1x128xf32>
    %27 = arith.addf %24, %26 : vector<1x128xf32>
    %c0_12 = arith.constant 0 : index
    %c0_13 = arith.constant 0 : index
    %28 = vector.load %arg4[%c0_12, %c0_13] : memref<1x128xf32, #tpu.memory_space<vmem>>, vector<1x128xf32>
    tpu.vector_store %arg4[%c0_12, %c0_13], %27 {strides = array<i32>} : memref<1x128xf32, #tpu.memory_space<vmem>>, vector<1x128xf32>,
    return
  }
  func.func @transform_0(%arg0: i32) -> (i32, i32) {
    %c0_i32 = arith.constant 0 : i32
    %c0_i32_0 = arith.constant 0 : i32
    return %c0_i32, %arg0 : i32, i32
  }
  func.func @transform_1(%arg0: i32) -> (i32, i32) {
    %c0_i32 = arith.constant 0 : i32
    %c0_i32_0 = arith.constant 0 : i32
    %c0_i32_1 = arith.constant 0 : i32
    return %c0_i32, %c0_i32_0 : i32, i32
  }
  func.func @transform_2(%arg0: i32) -> (i32, i32) {
    %c0_i32 = arith.constant 0 : i32
    %c0_i32_0 = arith.constant 0 : i32
    %c0_i32_1 = arith.constant 0 : i32
    return %c0_i32, %c0_i32_0 : i32, i32
  }
  func.func @transform_3(%arg0: i32) -> (i32, i32) {
    %c0_i32 = arith.constant 0 : i32
    %c0_i32_0 = arith.constant 0 : i32
    return %c0_i32, %arg0 : i32, i32
  }
}

module attributes {stable_mosaic.version = 11 : i64} {
  func.func @_features_linear_kernel(%arg0: i32, %arg1: memref<3x128xi32, #tpu.memory_space<vmem>>, %arg2: memref<48x1xf32, #tpu.memory_space<vmem>>, %arg3: memref<1x1xf32, #tpu.memory_space<smem>>, %arg4: memref<1x128xf32, #tpu.memory_space<vmem>>) attributes {dimension_semantics = [#tpu.dimension_semantics<parallel>], iteration_bounds = array<i64: 1>, scalar_prefetch = 0 : i64, scratch_operands = 0 : i64, tpu.core_type = #tpu.core_type<tc>, window_params = [{transform_indices = @transform_0, window_bounds = array<i64: 3, 128>}, {pipeline_mode = #tpu.pipeline_mode<synchronous>, transform_indices = @transform_1, window_bounds = array<i64: 48, 1>}, {transform_indices = @transform_2, window_bounds = array<i64: 1, 1>}, {transform_indices = @transform_3, window_bounds = array<i64: 1, 128>}]} {
    %cst = arith.constant 0.000000e+00 : f32
    %0 = vector.broadcast %cst : f32 to vector<1x128xf32>
    %c0 = arith.constant 0 : index
    %c0_0 = arith.constant 0 : index
    %1 = vector.load %arg1[%c0, %c0_0] : memref<3x128xi32, #tpu.memory_space<vmem>>, vector<1x128xi32>
    %2 = vector.shape_cast %1 : vector<1x128xi32> to vector<1x128xi32>
    %3 = vector.broadcast %2 : vector<1x128xi32> to vector<8x128xi32>
    %4 = tpu.iota {dimensions = array<i32: 0>} : vector<8x128xi32>
    %5 = arith.cmpi eq, %4, %3 : vector<8x128xi32>
    %c0_1 = arith.constant 0 : index
    %c0_2 = arith.constant 0 : index
    %6 = vector.load %arg2[%c0_1, %c0_2] : memref<48x1xf32, #tpu.memory_space<vmem>>, vector<8x1xf32>
    %cst_3 = arith.constant 0.000000e+00 : f32
    %7 = vector.shape_cast %6 : vector<8x1xf32> to vector<8x1xf32>
    %8 = vector.broadcast %7 : vector<8x1xf32> to vector<8x128xf32>
    %9 = vector.broadcast %cst_3 : f32 to vector<8x128xf32>
    %10 = arith.select %5, %8, %9 : vector<8x128xi1>, vector<8x128xf32>
    %cst_4 = arith.constant dense<0.000000e+00> : vector<128xf32>
    %11 = vector.multi_reduction <add>, %10, %cst_4 [0] : vector<8x128xf32> to vector<128xf32>
    %12 = vector.shape_cast %11 : vector<128xf32> to vector<1x128xf32>
    %13 = arith.addf %0, %12 : vector<1x128xf32>
    %c1 = arith.constant 1 : index
    %c0_5 = arith.constant 0 : index
    %14 = vector.load %arg1[%c1, %c0_5] : memref<3x128xi32, #tpu.memory_space<vmem>>, vector<1x128xi32>
    %15 = vector.shape_cast %14 : vector<1x128xi32> to vector<1x128xi32>
    %16 = vector.broadcast %15 : vector<1x128xi32> to vector<16x128xi32>
    %17 = tpu.iota {dimensions = array<i32: 0>} : vector<16x128xi32>
    %18 = arith.cmpi eq, %17, %16 : vector<16x128xi32>
    %c8 = arith.constant 8 : index
    %c0_6 = arith.constant 0 : index
    %19 = vector.load %arg2[%c8, %c0_6] : memref<48x1xf32, #tpu.memory_space<vmem>>, vector<16x1xf32>
    %cst_7 = arith.constant 0.000000e+00 : f32
    %20 = vector.shape_cast %19 : vector<16x1xf32> to vector<16x1xf32>
    %21 = vector.broadcast %20 : vector<16x1xf32> to vector<16x128xf32>
    %22 = vector.broadcast %cst_7 : f32 to vector<16x128xf32>
    %23 = arith.select %18, %21, %22 : vector<16x128xi1>, vector<16x128xf32>
    %cst_8 = arith.constant dense<0.000000e+00> : vector<128xf32>
    %24 = vector.multi_reduction <add>, %23, %cst_8 [0] : vector<16x128xf32> to vector<128xf32>
    %25 = vector.shape_cast %24 : vector<128xf32> to vector<1x128xf32>
    %26 = arith.addf %13, %25 : vector<1x128xf32>
    %c2 = arith.constant 2 : index
    %c0_9 = arith.constant 0 : index
    %27 = vector.load %arg1[%c2, %c0_9] : memref<3x128xi32, #tpu.memory_space<vmem>>, vector<1x128xi32>
    %28 = vector.shape_cast %27 : vector<1x128xi32> to vector<1x128xi32>
    %29 = vector.broadcast %28 : vector<1x128xi32> to vector<24x128xi32>
    %30 = tpu.iota {dimensions = array<i32: 0>} : vector<24x128xi32>
    %31 = arith.cmpi eq, %30, %29 : vector<24x128xi32>
    %c24 = arith.constant 24 : index
    %c0_10 = arith.constant 0 : index
    %32 = vector.load %arg2[%c24, %c0_10] : memref<48x1xf32, #tpu.memory_space<vmem>>, vector<24x1xf32>
    %cst_11 = arith.constant 0.000000e+00 : f32
    %33 = vector.shape_cast %32 : vector<24x1xf32> to vector<24x1xf32>
    %34 = vector.broadcast %33 : vector<24x1xf32> to vector<24x128xf32>
    %35 = vector.broadcast %cst_11 : f32 to vector<24x128xf32>
    %36 = arith.select %31, %34, %35 : vector<24x128xi1>, vector<24x128xf32>
    %cst_12 = arith.constant dense<0.000000e+00> : vector<128xf32>
    %37 = vector.multi_reduction <add>, %36, %cst_12 [0] : vector<24x128xf32> to vector<128xf32>
    %38 = vector.shape_cast %37 : vector<128xf32> to vector<1x128xf32>
    %39 = arith.addf %26, %38 : vector<1x128xf32>
    %c0_13 = arith.constant 0 : index
    %c0_14 = arith.constant 0 : index
    %40 = memref.load %arg3[%c0_13, %c0_14] : memref<1x1xf32, #tpu.memory_space<smem>>
    %41 = vector.broadcast %40 : f32 to vector<1x128xf32>
    %42 = arith.addf %39, %41 : vector<1x128xf32>
    %c0_15 = arith.constant 0 : index
    %c0_16 = arith.constant 0 : index
    %43 = vector.load %arg4[%c0_15, %c0_16] : memref<1x128xf32, #tpu.memory_space<vmem>>, vector<1x128xf32>
    tpu.vector_store %arg4[%c0_15, %c0_16], %42 {strides = array<i32>} : memref<1x128xf32, #tpu.memory_space<vmem>>, vector<1x128xf32>,
    return
  }
  func.func @transform_0(%arg0: i32) -> (i32, i32) {
    %c0_i32 = arith.constant 0 : i32
    %c0_i32_0 = arith.constant 0 : i32
    return %c0_i32, %arg0 : i32, i32
  }
  func.func @transform_1(%arg0: i32) -> (i32, i32) {
    %c0_i32 = arith.constant 0 : i32
    %c0_i32_0 = arith.constant 0 : i32
    %c0_i32_1 = arith.constant 0 : i32
    return %c0_i32, %c0_i32_0 : i32, i32
  }
  func.func @transform_2(%arg0: i32) -> (i32, i32) {
    %c0_i32 = arith.constant 0 : i32
    %c0_i32_0 = arith.constant 0 : i32
    %c0_i32_1 = arith.constant 0 : i32
    return %c0_i32, %c0_i32_0 : i32, i32
  }
  func.func @transform_3(%arg0: i32) -> (i32, i32) {
    %c0_i32 = arith.constant 0 : i32
    %c0_i32_0 = arith.constant 0 : i32
    return %c0_i32, %arg0 : i32, i32
  }
}

</mosaic_0001>

<bundles_post_ra>
// kernel: _features_linear_impl.1
= control target key start
LH: loop header
LB: loop body
LE: loop exit
PB: predicated region body
PF: predicated region fallthrough
CT: control target
= control target key end

     0   :  { %v16_v0 = vlaneseq  ;;  %v1785_v3 = vmov 0.0|0.0   ;;  %v1786_v9 = vmov 0.0   ;;  %vm1787_vm1 = vmmov 0   ;;  %s2040_s1 = inlined_call_operand.vmem [shape: f32[48,1], index: 1, kind: input, shape index: {}]   ;;  %s2041_s0 = inlined_call_operand.vmem [shape: s32[3,128], index: 0, kind: input, shape index: {}]   ;;  %s2042_s2 = inlined_call_operand.<no memory space> [shape: f32[1,1], index: 2, kind: input, shape index: {}]   ;;  %s2043_s3 = inlined_call_operand.vmem [shape: f32[1,128], index: 3, kind: output, shape index: {}]  }
   0x1   :  { %v26_v1 = vld [vmem:[%s2040_s1 + $0x8] sm:$0xff]  ;;  %v19_v2 = vld [vmem:[%s2040_s1] sm:$0xff]  ;;  %1747 = vmatprep.subr.bf16.mxu1 %v1785_v3  ;;  %1744 = vmatprep.subr.bf16.mxu0 %v1785_v3  ;;  %v27_v5 = vld [vmem:[%s2040_s1 + $0x10] sm:$0xff]  ;;  %v1788_v19 = vmov 1.0|1.0   ;;  %vm64_vm9 = vcmask 130048  }
   0x2   :  { %32 = vxpose.xlu0.b32.start [1/2] (short) (narrow) %v26_v1, 8  ;;  %527 = vxpose.xlu1.b32.start.end [1/1] (short) (narrow) %v19_v2, 8  ;;  %v1818_v4 = vshrl.u32 %v16_v0, 7  ;;  %v1014_v6 = vld [vmem:[%s2040_s1 + $0x18] sm:$0xff]  ;;  %v22_v7 = vld [vmem:[%s2041_s0 + $0x1] ss:$0 sm:$0xff] }
   0x3   :  { %1629 = vmatprep.mubr.msk.f32.mxu1 %vm1787_vm1, %v1786_v9  ;;  %1622 = vmatprep.mubr.msk.f32.mxu0 %vm1787_vm1, %v1786_v9  ;;  %v1839_v11 = vld [vmem:[%s2041_s0] ss:$0 sm:$0xff]  ;;  %v1859_v18 = vld [vmem:[%s2041_s0 + $0x2] ss:$0 sm:$0xff]  ;;  %v1016_v22 = vld [vmem:[%s2040_s1 + $0x28] sm:$0xff]  ;;  %vm559_vm10 = vcmask 64512  }
   0x4   :  { %v23_v8 = vadd.s32 8, %v1818_v4  ;;  %vm24_vm0 = vcmp.eq.s32.totalorder %v1818_v4, %v22_v7  ;;  %v1015_v13 = vld [vmem:[%s2040_s1 + $0x20] sm:$0xff]  ;;  %vm18_vm3 = vcmp.eq.s32.totalorder %v1818_v4, %v1839_v11  ;;  %vm1011_vm6 = vcmp.eq.s32.totalorder %v1818_v4, %v1859_v18 }
   0x5   :  { %v1541_v10 = vsel %vm24_vm0, 1.0, %v1786_v9  ;;  %v1552_v27 = vsel %vm1011_vm6, 1.0, %v1786_v9  ;;  %v1891_v35 = vadd.s32 16, %v1818_v4  ;;  %v1540_v44 = vsel %vm18_vm3, 1.0, %v1786_v9 }
   0x6   :  { %33 = vxpose.xlu0.b32.end [2/2] (short) (narrow) %v27_v5, 8  ;;  %1023 = vxpose.xlu1.b32.start [1/3] (short) (narrow) %v1014_v6, 8  ;;  %vm25_vm2 = vcmp.eq.s32.totalorder %v23_v8, %v22_v7  ;;  %v1841_v12 = vsub.f32 %v1541_v10, %v1541_v10  ;;  %vm1012_vm5 = vcmp.eq.s32.totalorder %v23_v8, %v1859_v18  ;;  %vm1055_vm11 = vcmask 195584  }
   0x7   :  { %v1542_v14 = vsel %vm25_vm2, 1.0, %v1786_v9  ;;  %vm1849_vm4 = vmpackc.low %vm25_vm2, %vm24_vm0  ;;  %v1553_v28 = vsel %vm1012_vm5, 1.0, %v1786_v9  ;;  %v1883_v30 = vsub.f32 %v1552_v27, %v1552_v27  ;;  %vm1013_vm7 = vcmp.eq.s32.totalorder %v1891_v35, %v1859_v18 }
   0x8   :  { %v148_v16 = vand.u32 4294901760, %v1841_v12  ;;  %v1854_v17 = vsub.f32 %v1542_v14, %v1542_v14  ;;  %1746 = vmatpush3.bf16.msk.msra.mxu0 %vm1849_vm4, %v1788_v19  ;;  %v1885_v31 = vsub.f32 %v1553_v28, %v1553_v28  ;;  %vm1904_vm8 = vmpackc.low %vm1012_vm5, %vm1011_vm6  ;;  %v1916_v45 = vsub.f32 %v1540_v44, %v1540_v44 }
   0x9   :  { %1750 = vmatprep.subr.bf16.mxu0 %v1785_v3  ;;  %v1140_v33 = vand.u32 4294901760, %v1883_v30  ;;  %v1554_v60 = vsel %vm1013_vm7, 1.0, %v1786_v9  ;;  %v1789_v5 = vmov 1.0  }
   0xa   :  { %1024 = vxpose.xlu1.b32.cont [2/3] (short) (narrow) %v1015_v13, 8  ;;  %v149_v20 = vsub.f32 %v1841_v12, %v148_v16  ;;  %v155_v21 = vand.u32 4294901760, %v1854_v17  ;;  %v1751_v25 = vpack.c.bf16 %v1854_v17, %v1841_v12  ;;  %v1147_v34 = vand.u32 4294901760, %v1885_v31 }
   0xb   :  { %v1141_v36 = vsub.f32 %v1883_v30, %v1140_v33  ;;  %v1769_v42 = vpack.c.bf16 %v1885_v31, %v1883_v30  ;;  %v642_v50 = vand.u32 4294901760, %v1916_v45  ;;  %v1943_v61 = vsub.f32 %v1554_v60, %v1554_v60 }
   0xc   :  { %v150_v23 = vand.u32 4294901760, %v149_v20  ;;  %v156_v24 = vsub.f32 %v1854_v17, %v155_v21  ;;  %v1757_v32 = vpack.c.bf16 %v155_v21, %v148_v16  ;;  %v1148_v37 = vsub.f32 %v1885_v31, %v1147_v34 }
   0xd   :  { %v1142_v38 = vand.u32 4294901760, %v1141_v36  ;;  %v1910_v43 = vpack.c.bf16 %v1147_v34, %v1140_v33  ;;  %v643_v55 = vsub.f32 %v1916_v45, %v642_v50  ;;  %v1154_v1 = vand.u32 4294901760, %v1943_v61 }
   0xe   :  { %1025 = vxpose.xlu1.b32.end [3/3] (short) (narrow) %v1016_v22, 8  ;;  %v157_v26 = vand.u32 4294901760, %v156_v24  ;;  %v1149_v39 = vand.u32 4294901760, %v1148_v37 }
   0xf   :  { %v644_v59 = vand.u32 4294901760, %v643_v55  ;;  %v1155_v7 = vsub.f32 %v1943_v61, %v1154_v1 }
  0x10   :  { %v1748_v29 = vpack.c.bf16 %v157_v26, %v150_v23  ;;  %v1897_v40 = vpack.c.bf16 %v1149_v39, %v1142_v38 }
  0x11   :  { %v1156_v4 = vand.u32 4294901760, %v1155_v7 }
  0x12   :  { %1749 = vmatpush3.bf16.msra.mxu1 %v1748_v29 }
  0x13   :  { %1753 = vmatprep.subr.bf16.mxu1 %v1785_v3 }
  0x82   :  { %v48_v46 = vpop.trf.xlu0  ;;  %v543_v47 = vpop.trf.xlu1 }
  0x83   :  { %v66_v48 = vsel %vm64_vm9, %v48_v46, 0  ;;  %v561_v51 = vsel %vm559_vm10, %v543_v47, 0 }
  0x84   :  { %v135_v49 = vand.u32 4294901760, %v66_v48  ;;  %v1924_v54 = vand.u32 4294901760, %v561_v51 }
  0x86   :  { %v136_v52 = vsub.f32 %v66_v48, %v135_v49  ;;  %1630 = vmatmul.mubr.f32.vlgmr.msra.gmra.mrb[0].mxu1 %v135_v49  ;;  %v630_v57 = vsub.f32 %v561_v51, %v1924_v54  ;;  %v1039_v63 = vpop.trf.xlu1 }
  0x87   :  { %1755 = vmatpush3.bf16.msk.msra.mxu1 %vm1849_vm4, %v1788_v19  ;;  %1643 = vmatprep.mubr.msk.f32.mxu1 %vm1787_vm1, %v1786_v9  ;;  %v1057_v0 = vsel %vm1055_vm11, %v1039_v63, 0 }
  0x88   :  { %v137_v53 = vand.u32 4294901760, %v136_v52  ;;  %1759 = vmatprep.subr.bf16.mxu1 %v1785_v3  ;;  %v631_v62 = vand.u32 4294901760, %v630_v57  ;;  %v1127_v6 = vand.u32 4294901760, %v1057_v0 }
  0x8a   :  { %1644 = vmatmul.mubr.f32.vlgmr.msra.gmra.mrb[2].mxu1 %v137_v53  ;;  %v138_v56 = vsub.f32 %v136_v52, %v137_v53  ;;  %v632_v2 = vsub.f32 %v630_v57, %v631_v62  ;;  %v1128_v10 = vsub.f32 %v1057_v0, %v1127_v6  ;;  %v1533_v0 = vstv %s2042_s2 }
  0x8b   :  { %1761 = vmatpush3.bf16.msk.msra.mxu1 %vm1849_vm4, %v1788_v19  ;;  %1657 = vmatprep.mubr.msk.f32.mxu1 %vm1787_vm1, %v1786_v9 }
  0x8c   :  { %v139_v58 = vand.u32 4294901760, %v138_v56  ;;  %1665 = vmatprep.subr.mxu1 %v1786_v9  ;;  %v633_v8 = vand.u32 4294901760, %v632_v2  ;;  %v1129_v11 = vand.u32 4294901760, %v1128_v10 }
  0x8e   :  { %1623 = vmatmul.mubr.f32.vlgmr.msra.gmra.mrb[0].mxu0 %v139_v58  ;;  %1658 = vmatmul.mubr.f32.vlgmr.msra.gmra.mrb[4].mxu1 %v135_v49  ;;  %v1130_v12 = vsub.f32 %v1128_v10, %v1129_v11 }
  0x8f   :  { %1752 = vmatpush3.bf16.msra.mxu0 %v1751_v25  ;;  %1636 = vmatprep.mubr.msk.f32.mxu0 %vm1787_vm1, %v1786_v9 }
  0x90   :  { %1666 = vmatpush3.msra.mxu1 %v644_v59  ;;  %1667 = vmatprep.mubr.msk.f32.mxu1 %vm1787_vm1, %v1786_v9  ;;  %v1131_v13 = vand.u32 4294901760, %v1130_v12 }
  0x91   :  { %1756 = vmatprep.subr.bf16.mxu0 %v1785_v3  ;;  %1675 = vmatprep.subr.mxu1 %v1786_v9 }
  0x92   :  { %1637 = vmatmul.mubr.f32.vlgmr.msra.gmra.mrb[2].mxu0 %v136_v52  ;;  %1668 = vmatmul.mubr.f32.vlgmr.msra.gmra.mrb[6].mxu1 %v1924_v54 }
  0x93   :  { %1758 = vmatpush3.bf16.msra.mxu0 %v1757_v32  ;;  %1650 = vmatprep.mubr.msk.f32.mxu0 %vm1787_vm1, %v1786_v9 }
  0x94   :  { %1676 = vmatpush3.msk.msra.mxu1 %vm18_vm3, %v1789_v5  ;;  %1677 = vmatprep.mubr.msk.f32.mxu1 %vm1787_vm1, %v1786_v9 }
  0x95   :  { %1660 = vmatprep.subr.mxu0 %v1786_v9  ;;  %1685 = vmatprep.subr.mxu1 %v1786_v9 }
  0x96   :  { %1651 = vmatmul.mubr.f32.vlgmr.msra.gmra.mrb[4].mxu0 %v135_v49  ;;  %1678 = vmatmul.mubr.f32.vlgmr.msra.gmra.mrb[8].mxu1 %v631_v62 }
  0x97   :  { %1661 = vmatpush3.msk.msra.mxu0 %vm18_vm3, %v1789_v5  ;;  %1686 = vmatpush3.msk.msra.mxu1 %vm18_vm3, %v1789_v5 }
  0x98   :  { %1662 = vmatprep.mubr.msk.f32.mxu0 %vm1787_vm1, %v1786_v9  ;;  %1687 = vmatprep.mubr.msk.f32.mxu1 %vm1787_vm1, %v1786_v9 }
  0x99   :  { %1765 = vmatprep.subr.bf16.mxu1 %v1785_v3  ;;  %1670 = vmatprep.subr.mxu0 %v1786_v9 }
  0x9a   :  { %1663 = vmatmul.mubr.f32.vlgmr.msra.gmra.mrb[6].mxu0 %v633_v8  ;;  %1688 = vmatmul.mubr.f32.vlgmr.msra.gmra.mrb[10].mxu1 %v1924_v54 }
  0x9b   :  { %1767 = vmatpush3.bf16.msra.mxu1 %v1897_v40  ;;  %1671 = vmatpush3.msra.mxu0 %v1916_v45 }
  0x9c   :  { %1672 = vmatprep.mubr.msk.f32.mxu0 %vm1787_vm1, %v1786_v9  ;;  %1703 = vmatprep.subr.mxu1 %v1786_v9 }
  0x9d   :  { %1680 = vmatprep.subr.mxu0 %v1786_v9  ;;  %1705 = vmatprep.mubr.msk.f32.mxu1 %vm1787_vm1, %v1786_v9 }
  0x9e   :  { %1673 = vmatmul.mubr.f32.vlgmr.msra.gmra.mrb[8].mxu0 %v630_v57 }
  0x9f   :  { %1704 = vmatpush3.msra.mxu1 %v1156_v4  ;;  %1681 = vmatpush3.msra.mxu0 %v642_v50 }
  0xa0   :  { %1706 = vmatmul.mubr.f32.vlgmr.msra.gmra.mrb[12].mxu1 %v1127_v6  ;;  %1771 = vmatprep.subr.bf16.mxu1 %v1785_v3 }
  0xa1   :  { %1773 = vmatpush3.bf16.msk.msra.mxu1 %vm1904_vm8, %v1788_v19  ;;  %1682 = vmatprep.mubr.msk.f32.mxu0 %vm1787_vm1, %v1786_v9 }
  0xa2   :  { %1762 = vmatprep.subr.bf16.mxu0 %v1785_v3  ;;  %1683 = vmatmul.mubr.f32.vlgmr.msra.gmra.mrb[10].mxu0 %v1924_v54 }
  0xa3   :  { %1764 = vmatpush3.bf16.msk.msra.mxu0 %vm1904_vm8, %v1788_v19  ;;  %1721 = vmatprep.subr.mxu1 %v1786_v9 }
  0xa4   :  { %1723 = vmatprep.mubr.msk.f32.mxu1 %vm1787_vm1, %v1786_v9  ;;  %1694 = vmatprep.subr.mxu0 %v1786_v9 }
  0xa5   :  { %1722 = vmatpush3.msk.msra.mxu1 %vm1013_vm7, %v1789_v5  ;;  %1696 = vmatprep.mubr.msk.f32.mxu0 %vm1787_vm1, %v1786_v9 }
  0xa6   :  { %1724 = vmatmul.mubr.f32.vlgmr.msra.gmra.mrb[14].mxu1 %v1129_v11  ;;  %1777 = vmatprep.subr.bf16.mxu1 %v1785_v3 }
  0xa7   :  { %1695 = vmatpush3.msk.msra.mxu0 %vm1013_vm7, %v1789_v5  ;;  %1779 = vmatpush3.bf16.msk.msra.mxu1 %vm1904_vm8, %v1788_v19 }
  0xa8   :  { %1697 = vmatmul.mubr.f32.vlgmr.msra.gmra.mrb[12].mxu0 %v1131_v13  ;;  %1768 = vmatprep.subr.bf16.mxu0 %v1785_v3 }
  0xa9   :  { %1770 = vmatpush3.bf16.msra.mxu0 %v1769_v42  ;;  %1739 = vmatprep.subr.mxu1 %v1786_v9 }
  0xaa   :  { %1741 = vmatprep.mubr.msk.f32.mxu1 %vm1787_vm1, %v1786_v9  ;;  %1712 = vmatprep.subr.mxu0 %v1786_v9 }
  0xab   :  { %1740 = vmatpush3.msk.msra.mxu1 %vm1013_vm7, %v1789_v5  ;;  %1714 = vmatprep.mubr.msk.f32.mxu0 %vm1787_vm1, %v1786_v9 }
  0xac   :  { %1742 = vmatmul.mubr.f32.vlgmr.msra.gmra.mrb[16].mxu1 %v1127_v6 }
  0xad   :  { %1713 = vmatpush3.msra.mxu0 %v1943_v61 }
  0xae   :  { %1715 = vmatmul.mubr.f32.vlgmr.msra.gmra.mrb[14].mxu0 %v1128_v10  ;;  %1774 = vmatprep.subr.bf16.mxu0 %v1785_v3 }
  0xaf   :  { %1776 = vmatpush3.bf16.msra.mxu0 %v1910_v43  ;;  %1732 = vmatprep.mubr.msk.f32.mxu0 %vm1787_vm1, %v1786_v9 }
  0xb0   :  { %1730 = vmatprep.subr.mxu0 %v1786_v9 }
  0xb3   :  { %1731 = vmatpush3.msra.mxu0 %v1154_v1 }
  0xb4   :  { %1733 = vmatmul.mubr.f32.vlgmr.msra.gmra.mrb[16].mxu0 %v1127_v6 }
 0x159   :  { %v222_v14 = vpop.f32.mrb[0].mxu1 }
 0x15a   :  { %v1631_v15 = vpop.f32.mrb[1].mxu1 }
 0x15d   :  { %v373_v16 = vpop.f32.mrb[2].mxu1 }
 0x15e   :  { %v1645_v17 = vpop.f32.mrb[3].mxu1 }
 0x161   :  { %v141_v18 = vpop.f32.mrb[0].mxu0  ;;  %v523_v19 = vpop.f32.mrb[4].mxu1 }
 0x162   :  { %v223_v20 = vadd.f32 %v222_v14, %v141_v18  ;;  %v1624_v21 = vpop.f32.mrb[1].mxu0  ;;  %v1659_v3 = vpop.f32.mrb[5].mxu1 }
 0x165   :  { %v298_v22 = vpop.f32.mrb[2].mxu0  ;;  %v711_v23 = vpop.f32.mrb[6].mxu1 }
 0x166   :  { %v299_v24 = vadd.f32 %v298_v22, %v223_v20  ;;  %v1638_v25 = vpop.f32.mrb[3].mxu0  ;;  %v1669_v26 = vpop.f32.mrb[7].mxu1 }
 0x168   :  { %v374_v27 = vadd.f32 %v373_v16, %v299_v24 }
 0x169   :  { %v450_v9 = vpop.f32.mrb[4].mxu0  ;;  %v859_v28 = vpop.f32.mrb[8].mxu1 }
 0x16a   :  { %v451_v29 = vadd.f32 %v450_v9, %v374_v27  ;;  %v1652_v30 = vpop.f32.mrb[5].mxu0  ;;  %v1679_v31 = vpop.f32.mrb[9].mxu1 }
 0x16c   :  { %v524_v32 = vadd.f32 %v523_v19, %v451_v29 }
 0x16d   :  { %v635_v33 = vpop.f32.mrb[6].mxu0  ;;  %v1005_v34 = vpop.f32.mrb[10].mxu1 }
 0x16e   :  { %v636_v35 = vadd.f32 %v635_v33, %v524_v32  ;;  %v1664_v36 = vpop.f32.mrb[7].mxu0  ;;  %v1689_v37 = vpop.f32.mrb[11].mxu1 }
 0x170   :  { %v712_v38 = vadd.f32 %v711_v23, %v636_v35 }
 0x171   :  { %v785_v39 = vpop.f32.mrb[8].mxu0 }
 0x172   :  { %v786_v40 = vadd.f32 %v785_v39, %v712_v38  ;;  %v1674_v41 = vpop.f32.mrb[9].mxu0 }
 0x173   :  { %v1219_v42 = vpop.f32.mrb[12].mxu1 }
 0x174   :  { %v1707_v43 = vpop.f32.mrb[13].mxu1  ;;  %v860_v44 = vadd.f32 %v859_v28, %v786_v40 }
 0x175   :  { %v933_v45 = vpop.f32.mrb[10].mxu0 }
 0x176   :  { %v934_v46 = vadd.f32 %v933_v45, %v860_v44  ;;  %v1684_v47 = vpop.f32.mrb[11].mxu0 }
 0x178   :  { %v1006_v48 = vadd.f32 %v1005_v34, %v934_v46 }
 0x179   :  { %v1373_v49 = vpop.f32.mrb[14].mxu1 }
 0x17a   :  { %v1725_v50 = vpop.f32.mrb[15].mxu1 }
 0x17b   :  { %v1133_v51 = vpop.f32.mrb[12].mxu0 }
 0x17c   :  { %v1220_v52 = vadd.f32 %v1219_v42, %v1133_v51  ;;  %v1698_v53 = vpop.f32.mrb[13].mxu0 }
 0x17f   :  { %v1527_v54 = vpop.f32.mrb[16].mxu1 }
 0x180   :  { %v1743_v55 = vpop.f32.mrb[17].mxu1 }
 0x181   :  { %v1297_v56 = vpop.f32.mrb[14].mxu0 }
 0x182   :  { %v1298_v57 = vadd.f32 %v1297_v56, %v1220_v52  ;;  %v1716_v58 = vpop.f32.mrb[15].mxu0 }
 0x184   :  { %v1374_v59 = vadd.f32 %v1373_v49, %v1298_v57 }
 0x187   :  { %v1453_v60 = vpop.f32.mrb[16].mxu0 }
 0x188   :  { %v1454_v61 = vadd.f32 %v1453_v60, %v1374_v59  ;;  %v1734_v62 = vpop.f32.mrb[17].mxu0 }
 0x18a   :  { %v1528_v63 = vadd.f32 %v1527_v54, %v1454_v61 }
 0x18c   :  { %v1531_v1 = vadd.f32 %v1528_v63, %v1006_v48 }
 0x18e   :  { %v1534_v2 = vadd.f32 %v1533_v0, %v1531_v1 }
 0x190   :  { %1535 = vst [vmem:[%s2043_s3] sm:$0x1] %v1534_v2 }

// kernel: _features_linear_impl.1
= control target key start
LH: loop header
LB: loop body
LE: loop exit
PB: predicated region body
PF: predicated region fallthrough
CT: control target
= control target key end

     0   :  { %v120_v0 = vmov 0   ;;  %v20_v7 = vlaneseq  ;;  %s174_s1 = inlined_call_operand.vmem [shape: f32[48,1], index: 1, kind: input, shape index: {}]   ;;  %s175_s0 = inlined_call_operand.vmem [shape: s32[3,128], index: 0, kind: input, shape index: {}]   ;;  %s176_s2 = inlined_call_operand.<no memory space> [shape: f32[1,1], index: 2, kind: input, shape index: {}]   ;;  %s177_s3 = inlined_call_operand.vmem [shape: f32[1,128], index: 3, kind: output, shape index: {}]  }
   0x1   :  { %119 = vset.pattern.permute.xlu1 %v120_v0  ;;  %118 = vset.pattern.permute.xlu0 %v120_v0  ;;  %v76_v1 = vld [vmem:[%s174_s1 + $0x18] sm:$0xff]  ;;  %v45_v2 = vld [vmem:[%s174_s1 + $0x8] sm:$0xff]  ;;  %v77_v3 = vld [vmem:[%s174_s1 + $0x20] sm:$0xff]  ;;  %v107_v48 = vstv %s176_s2 }
   0x2   :  { %81 = vperm.xlu1 %119, %v76_v1   ;;  %49 = vperm.xlu0 %118, %v45_v2   ;;  %v46_v4 = vld [vmem:[%s174_s1 + $0x10] sm:$0xff]  ;;  %v78_v5 = vld [vmem:[%s174_s1 + $0x28] sm:$0xff]  ;;  %v23_v6 = vld [vmem:[%s174_s1] sm:$0xff]  ;;  %v21_v8 = vshrl.u32 %v20_v7, 7 }
   0x3   :  { %v115_v10 = vld [vmem:[%s175_s0 + $0x1] ss:$0 sm:$0xff]  ;;  %v116_v13 = vld [vmem:[%s175_s0 + $0x2] ss:$0 sm:$0xff]  ;;  %v114_v15 = vld [vmem:[%s175_s0] ss:$0 sm:$0xff] }
   0x4   :  { %v42_v9 = vadd.s32 8, %v21_v8  ;;  %vm43_vm0 = vcmp.eq.s32.totalorder %v21_v8, %v115_v10  ;;  %v72_v14 = vadd.s32 16, %v21_v8  ;;  %vm73_vm3 = vcmp.eq.s32.totalorder %v21_v8, %v116_v13 }
   0x5   :  { %vm22_vm5 = vcmp.eq.s32.totalorder %v21_v8, %v114_v15 }
   0x6   :  { %86 = vperm.xlu1 %119, %v77_v3   ;;  %54 = vperm.xlu0 %118, %v46_v4   ;;  %vm74_vm1 = vcmp.eq.s32.totalorder %v42_v9, %v116_v13  ;;  %vm44_vm2 = vcmp.eq.s32.totalorder %v42_v9, %v115_v10  ;;  %vm75_vm4 = vcmp.eq.s32.totalorder %v72_v14, %v116_v13 }
   0xa   :  { %91 = vperm.xlu1 %119, %v78_v5   ;;  %26 = vperm.xlu0 %118, %v23_v6  }
  0x81   :  { %v82_v11 = vpop.permute.xlu1 %81  ;;  %v50_v12 = vpop.permute.xlu0 %49 }
  0x82   :  { %v57_v18 = vsel %vm43_vm0, %v50_v12, 0.0  ;;  %v94_v22 = vsel %vm73_vm3, %v82_v11, 0.0 }
  0x85   :  { %v87_v16 = vpop.permute.xlu1 %86  ;;  %v55_v17 = vpop.permute.xlu0 %54 }
  0x86   :  { %v95_v19 = vsel %vm74_vm1, %v87_v16, 0.0  ;;  %v58_v20 = vsel %vm44_vm2, %v55_v17, 0.0 }
  0x87   :  { %v59_v21 = vadd.f32 %v58_v20, %v57_v18  ;;  %v97_v23 = vadd.f32 %v95_v19, %v94_v22 }
  0x89   :  { %v60_v24 = vrot.slane %v59_v21, 4  ;;  %v92_v25 = vpop.permute.xlu1 %91  ;;  %v27_v26 = vpop.permute.xlu0 %26 }
  0x8a   :  { %v96_v27 = vsel %vm75_vm4, %v92_v25, 0.0  ;;  %v29_v28 = vsel %vm22_vm5, %v27_v26, 0.0 }
  0x8b   :  { %v61_v29 = vadd.f32 %v60_v24, %v59_v21  ;;  %v98_v30 = vadd.f32 %v97_v23, %v96_v27  ;;  %v30_v31 = vrot.slane %v29_v28, 4 }
  0x8d   :  { %v62_v32 = vrot.slane %v61_v29, 2  ;;  %v99_v33 = vrot.slane %v98_v30, 4  ;;  %v31_v34 = vadd.f32 %v30_v31, %v29_v28 }
  0x8f   :  { %v63_v35 = vadd.f32 %v62_v32, %v61_v29  ;;  %v100_v36 = vadd.f32 %v99_v33, %v98_v30  ;;  %v32_v37 = vrot.slane %v31_v34, 2 }
  0x91   :  { %v64_v38 = vrot.slane %v63_v35, 1  ;;  %v101_v39 = vrot.slane %v100_v36, 2  ;;  %v33_v40 = vadd.f32 %v32_v37, %v31_v34 }
  0x93   :  { %v102_v41 = vadd.f32 %v101_v39, %v100_v36  ;;  %v34_v42 = vrot.slane %v33_v40, 1  ;;  %v65_v43 = vadd.f32 %v64_v38, %v63_v35 }
  0x95   :  { %v103_v44 = vrot.slane %v102_v41, 1  ;;  %v35_v45 = vadd.f32 %v34_v42, %v33_v40 }
  0x97   :  { %v104_v46 = vadd.f32 %v103_v44, %v102_v41  ;;  %v66_v47 = vadd.f32 %v65_v43, %v35_v45 }
  0x99   :  { %v105_v49 = vadd.f32 %v104_v46, %v66_v47 }
  0x9b   :  { %v108_v50 = vadd.f32 %v107_v48, %v105_v49 }
  0x9d   :  { %109 = vst [vmem:[%s177_s3] sm:$0x1] %v108_v50 }

</bundles_post_ra>
